<compile_context>
chip_gen: v7x
topology: tpu7x:2x2x1
jax: 0.10.0
libtpu: 0.0.40
codegen_flags: <defaults>
</compile_context>

<pallas_src>
import functools

import jax
import jax.numpy as jnp
from jax.experimental import pallas as pl
from jax.experimental.pallas import tpu as pltpu

LANE = 128


def _round_up(x, m):
    return (x + m - 1) // m * m


# ----------------------------- Phase 1: linear ------------------------------
def _linear_kernel(seq_ref, w_ref, out_ref, *, n_nodes, tile, mask_rows,
                   precision):
    # seq_ref: (1, T, in_ft)   w_ref: (in_ft, F)   out_ref: (1, T, F)
    y = jnp.dot(seq_ref[0], w_ref[...],
                preferred_element_type=jnp.float32, precision=precision)
    if mask_rows:
        # Tail row tile reads garbage rows past N; zero them so the padded
        # seq_fts rows are finite (phase 2 relies on this).
        i = pl.program_id(1)
        row = jax.lax.broadcasted_iota(jnp.int32, y.shape, 0) + i * tile
        y = jnp.where(row < n_nodes, y, jnp.zeros_like(y))
    out_ref[0] = y.astype(out_ref.dtype)


# -------------------------- Phase 2: propagation ----------------------------
def _prop_kernel(alpha_ref, adj_ref, fts_ref, bias_ref, out_ref, *, n_nodes,
                 tile, resident_fts, mask_tail, precision):
    # adj_ref: (1, T, T) native dtype     bias_ref: (1, F) f32
    # fts_ref: (1, n_kp, F) resident  or  (1, T, F) tiled
    # alpha_ref: (1,) SMEM                out_ref: (1, T, F) f32 accumulator
    k = pl.program_id(2)
    nk = pl.num_programs(2)

    a = adj_ref[0]
    if mask_tail:
        # Columns past N in the tail K tile hold unspecified data (Pallas
        # does not zero OOB reads); zero them before they enter the MXU.
        col = jax.lax.broadcasted_iota(jnp.int32, a.shape, 1) + k * tile
        a = jnp.where(col < n_nodes, a, jnp.zeros_like(a))

    if resident_fts:
        start = pl.multiple_of(k * tile, tile)
        f = fts_ref[0, pl.ds(start, tile), :]
    else:
        f = fts_ref[0]

    contrib = jnp.dot(a, f, preferred_element_type=jnp.float32,
                      precision=precision)

    @pl.when(k == 0)
    def _():
        out_ref[0] = contrib

    @pl.when(k > 0)
    def _():
        out_ref[0] += contrib

    @pl.when(k == nk - 1)
    def _():
        o = out_ref[0] + bias_ref[...]                 # f32 bias add
        alpha = alpha_ref[0]                           # shared PReLU slope
        out_ref[0] = jnp.where(o > 0, o, alpha * o)


# --------------------------------- wrapper ----------------------------------
def gcn_forward(seq, adj, weight, bias, alpha, *, tile_n=1024, fts_dtype=None,
                vmem_budget_bytes=40 << 20):
    """seq: (B, N, in_ft), adj: (B, N, N) (f32 or pre-cast bf16; used as-is),
    weight: (out_ft, in_ft), bias: (out_ft,), alpha: PReLU slope.
    Returns (B, N, out_ft) float32."""
    B, N, in_ft = seq.shape
    out_ft = weight.shape[0]
    assert adj.shape == (B, N, N)

    if fts_dtype is None:
        fts_dtype = adj.dtype              # bf16 adj -> bf16 seq_fts
    adj_bytes = jnp.dtype(adj.dtype).itemsize
    fts_bytes = jnp.dtype(fts_dtype).itemsize

    # Lane-dense feature width (unmasked vst); 128 is optimal on v5e, fine on
    # v6e/v7x while the phase-2 kernel is HBM-bound.
    out_ft_p = _round_up(out_ft, LANE)

    # Node tile: 128-aligned, or the full N when it already fits one tile.
    tile_n = max(LANE, (tile_n // LANE) * LANE)
    t = N if N <= tile_n else tile_n
    nk = (N + t - 1) // t                  # row tiles == K tiles
    n_kp = nk * t                          # padded node count for seq_fts
    ragged = (n_kp != N)

    # Phase-2 VMEM estimate (double-buffered) -> residency + vmem limit.
    def _phase2_vmem(resident):
        fts_rows = n_kp if resident else t
        return (2 * t * t * adj_bytes                # adj tiles
                + 2 * t * out_ft_p * 4               # f32 output tiles
                + 2 * fts_rows * out_ft_p * fts_bytes
                + 2 * out_ft_p * 4)                  # bias
    resident_fts = _phase2_vmem(True) <= vmem_budget_bytes
    vmem_needed = _phase2_vmem(resident_fts)
    # Cap at 48 MiB: safe on v7x (64 MiB physical) as well as v5e/v6e.
    vmem_limit = int(min(48 << 20, max(32 << 20, vmem_needed * 3 // 2)))

    # f32 operands -> HIGHEST precision on the MXU (match PyTorch numerics);
    # bf16 perf path -> default single-pass bf16.
    f32_phase2 = (adj.dtype == jnp.float32 and fts_dtype == jnp.float32)
    prec2 = jax.lax.Precision.HIGHEST if f32_phase2 else jax.lax.Precision.DEFAULT
    prec1 = (jax.lax.Precision.HIGHEST if fts_dtype == jnp.float32
             else jax.lax.Precision.DEFAULT)

    # Small parameters only are padded / cast in the wrapper.
    w_t = jnp.pad(weight.T, ((0, 0), (0, out_ft_p - out_ft))).astype(jnp.float32)
    bias_p = jnp.pad(bias.astype(jnp.float32),
                     (0, out_ft_p - out_ft)).reshape(1, out_ft_p)
    alpha1d = jnp.asarray(alpha, jnp.float32).reshape(1)

    # ---- Phase 1: seq_fts = seq @ W^T (hoisted out of the propagation) ----
    seq_fts = pl.pallas_call(
        functools.partial(_linear_kernel, n_nodes=N, tile=t,
                          mask_rows=ragged, precision=prec1),
        out_shape=jax.ShapeDtypeStruct((B, n_kp, out_ft_p), fts_dtype),
        grid_spec=pltpu.PrefetchScalarGridSpec(
            num_scalar_prefetch=0,
            grid=(B, nk),
            in_specs=[
                pl.BlockSpec((1, t, in_ft), lambda b, i: (b, i, 0)),      # seq
                pl.BlockSpec((in_ft, out_ft_p), lambda b, i: (0, 0)),     # W^T
            ],
            out_specs=pl.BlockSpec((1, t, out_ft_p), lambda b, i: (b, i, 0)),
        ),
        compiler_params=pltpu.CompilerParams(
            dimension_semantics=("parallel", "parallel")),
    )(seq, w_t)

    # ---- Phase 2: out = PReLU(adj @ seq_fts + bias) ----
    if resident_fts:
        fts_spec = pl.BlockSpec((1, n_kp, out_ft_p), lambda b, i, k: (b, 0, 0))
    else:
        fts_spec = pl.BlockSpec((1, t, out_ft_p), lambda b, i, k: (b, k, 0))

    out_p = pl.pallas_call(
        functools.partial(_prop_kernel, n_nodes=N, tile=t,
                          resident_fts=resident_fts, mask_tail=ragged,
                          precision=prec2),
        out_shape=jax.ShapeDtypeStruct((B, N, out_ft_p), jnp.float32),
        grid_spec=pltpu.PrefetchScalarGridSpec(
            num_scalar_prefetch=0,
            grid=(B, nk, nk),                                       # K last
            in_specs=[
                pl.BlockSpec(memory_space=pltpu.MemorySpace.SMEM),  # alpha
                pl.BlockSpec((1, t, t), lambda b, i, k: (b, i, k)),  # adj
                fts_spec,                                            # seq_fts
                pl.BlockSpec((1, out_ft_p), lambda b, i, k: (0, 0)),  # bias
            ],
            out_specs=pl.BlockSpec((1, t, out_ft_p), lambda b, i, k: (b, i, 0)),
        ),
        compiler_params=pltpu.CompilerParams(
            dimension_semantics=("parallel", "parallel", "arbitrary"),
            vmem_limit_bytes=vmem_limit),
    )(alpha1d, adj, seq_fts, bias_p)

    return out_p[..., :out_ft] if out_ft_p != out_ft else out_p


def gcn_reference(seq, adj, weight, bias, alpha):
    hi = jax.lax.Precision.HIGHEST
    seq_fts = jnp.einsum("bni,oi->bno", seq, weight, precision=hi)
    out = jnp.einsum("bnm,bmo->bno", adj, seq_fts, precision=hi) + bias
    return jnp.where(out > 0, out, alpha * out)


if __name__ == "__main__":
    def make_inputs(key, B, N, in_ft, out_ft):
        k_seq, k_adj, k_w = jax.random.split(key, 3)
        seq = jax.random.normal(k_seq, (B, N, in_ft), dtype=jnp.float32)
        a = jax.random.uniform(k_adj, (B, N, N), dtype=jnp.float32)
        a = 0.5 * (a + jnp.swapaxes(a, 1, 2)) + jnp.eye(N, dtype=jnp.float32)[None]
        adj = a / jnp.sum(a, axis=-1, keepdims=True)   # row-normalized + loops
        bound = (6.0 / (in_ft + out_ft)) ** 0.5        # xavier_uniform_
        w = jax.random.uniform(k_w, (out_ft, in_ft), dtype=jnp.float32,
                               minval=-bound, maxval=bound)
        b = jnp.zeros((out_ft,), jnp.float32)          # bias.data.fill_(0.0)
        return seq, adj, w, b

    alpha = 0.25                                        # PReLU default slope
    key = jax.random.PRNGKey(0)
    k1, k2 = jax.random.split(key)

    # Case 1: tiny shapes, single tile, f32 path (tight numerics).
    seq, adj, w, b = make_inputs(k1, B=2, N=16, in_ft=8, out_ft=32)
    ref = gcn_reference(seq, adj, w, b, alpha)
    out = jax.block_until_ready(gcn_forward(seq, adj, w, b, alpha))
    assert out.shape == (2, 16, 32)
    assert jnp.allclose(out, ref, atol=1e-5, rtol=1e-5)

    # Case 2: N not a multiple of the tile -> exercises multi-tile K
    # accumulation and in-kernel tail masking (adj stays unpadded, f32).
    seq2, adj2, w2, b2 = make_inputs(k2, B=2, N=200, in_ft=8, out_ft=32)
    ref2 = gcn_reference(seq2, adj2, w2, b2, alpha)
    out2 = jax.block_until_ready(
        gcn_forward(seq2, adj2, w2, b2, alpha, tile_n=128))
    assert out2.shape == (2, 200, 32)
    assert jnp.allclose(out2, ref2, atol=1e-5, rtol=1e-5)

    # Case 3: bf16 perf path — adj is cast ONCE outside the forward (cached /
    # reused across calls); seq_fts follows adj dtype, f32 MXU accumulation.
    adj2_bf16 = adj2.astype(jnp.bfloat16)
    out3 = jax.block_until_ready(
        gcn_forward(seq2, adj2_bf16, w2, b2, alpha, tile_n=128))
    assert out3.shape == (2, 200, 32)
    assert jnp.allclose(out3, ref2, atol=5e-2, rtol=5e-2)

    print("KERNEL_OK")
</pallas_src>

<mosaic_0001>
module attributes {stable_mosaic.version = 11 : i64} {
  func.func @_linear_kernel(%arg0: i32, %arg1: i32, %arg2: memref<1x16x8xf32, #tpu.memory_space<vmem>>, %arg3: memref<8x128xf32, #tpu.memory_space<vmem>>, %arg4: memref<1x16x128xf32, #tpu.memory_space<vmem>>) attributes {dimension_semantics = [#tpu.dimension_semantics<parallel>, #tpu.dimension_semantics<parallel>], iteration_bounds = array<i64: 2, 1>, scalar_prefetch = 0 : i64, scratch_operands = 0 : i64, tpu.core_type = #tpu.core_type<tc>, window_params = [{transform_indices = @transform_0, window_bounds = array<i64: 1, 16, 8>}, {pipeline_mode = #tpu.pipeline_mode<synchronous>, transform_indices = @transform_1, window_bounds = array<i64: 8, 128>}, {transform_indices = @transform_2, window_bounds = array<i64: 1, 16, 128>}]} {
    %c0 = arith.constant 0 : index
    %c0_0 = arith.constant 0 : index
    %c0_1 = arith.constant 0 : index
    %0 = vector.load %arg2[%c0, %c0_0, %c0_1] : memref<1x16x8xf32, #tpu.memory_space<vmem>>, vector<1x16x8xf32>
    %1 = vector.shape_cast %0 : vector<1x16x8xf32> to vector<16x8xf32>
    %c0_2 = arith.constant 0 : index
    %c0_3 = arith.constant 0 : index
    %2 = vector.load %arg3[%c0_2, %c0_3] : memref<8x128xf32, #tpu.memory_space<vmem>>, vector<8x128xf32>
    %cst = arith.constant dense<0.000000e+00> : vector<16x128xf32>
    %3 = tpu.matmul %1, %2, %cst {dimension_numbers = #tpu.dot_dimension_numbers<[1], [0], [0], [1], [0, 0, 1, 1], [], []>, precision = #tpu.contract_precision<fp32>} : vector<16x8xf32>, vector<8x128xf32>, vector<16x128xf32> -> vector<16x128xf32>
    %c0_4 = arith.constant 0 : index
    %c0_5 = arith.constant 0 : index
    %c0_6 = arith.constant 0 : index
    %4 = vector.load %arg4[%c0_4, %c0_5, %c0_6] : memref<1x16x128xf32, #tpu.memory_space<vmem>>, vector<1x16x128xf32>
    %5 = vector.shape_cast %4 : vector<1x16x128xf32> to vector<16x128xf32>
    %6 = vector.shape_cast %3 : vector<16x128xf32> to vector<1x16x128xf32>
    tpu.vector_store %arg4[%c0_4, %c0_5, %c0_6], %6 {strides = array<i32>} : memref<1x16x128xf32, #tpu.memory_space<vmem>>, vector<1x16x128xf32>,
    return
  }
  func.func @transform_0(%arg0: i32, %arg1: i32) -> (i32, i32, i32) {
    %c0_i32 = arith.constant 0 : i32
    %c0_i32_0 = arith.constant 0 : i32
    return %arg0, %arg1, %c0_i32 : i32, i32, i32
  }
  func.func @transform_1(%arg0: i32, %arg1: i32) -> (i32, i32) {
    %c0_i32 = arith.constant 0 : i32
    %c0_i32_0 = arith.constant 0 : i32
    %c0_i32_1 = arith.constant 0 : i32
    return %c0_i32, %c0_i32_0 : i32, i32
  }
  func.func @transform_2(%arg0: i32, %arg1: i32) -> (i32, i32, i32) {
    %c0_i32 = arith.constant 0 : i32
    %c0_i32_0 = arith.constant 0 : i32
    return %arg0, %arg1, %c0_i32 : i32, i32, i32
  }
}

</mosaic_0001>

<bundles_post_ra>
// kernel: tpu_custom_call.1
= control target key start
LH: loop header
LB: loop body
LE: loop exit
PB: predicated region body
PF: predicated region fallthrough
CT: control target
= control target key end

     0   :  { %7 = vsyncpa [#allocation3], 0  ;;  %s1115_s0 = inlined_call_operand.vmem [shape: f32[2,16,8], index: 0, kind: input, shape index: {}]   ;;  %s1116_s1 = inlined_call_operand.vmem [shape: f32[8,128], index: 1, kind: input, shape index: {}]   ;;  %s1117_s2 = inlined_call_operand.hbm [shape: f32[2,16,128], index: 2, kind: output, shape index: {}]  }
   0x1   :  { %9 = vsyncpa [#allocation3 + $0x1], 0  ;;  %s997_s9 = smov 0   ;;  %s999_s10 = smov 0  }
   0x2   :  { %s1001_s11 = smov 0   ;;  %s1003_s12 = smov 0  }
   0x3   :  { %s1005_s13 = smov 0   ;;  %s1007_s14 = smov 0  }
   0x4 LB: > { %s769_s15 = sadd.s32 4294967295, %s977_s14   ;;  %s770_s16 = sadd.s32 4294967294, %s977_s14   ;;  %s977_s14 = sphi %s1007_s14, %s15_s14   ;;  %s973_s13 = sphi %s1005_s13, %s1124_s13   ;;  %s969_s12 = sphi %s1003_s12, %s1123_s12   ;;  %s965_s11 = sphi %s1001_s11, %s1122_s11   ;;  %s961_s10 = sphi %s999_s10, %s1121_s10   ;;  %s957_s9 = sphi %s997_s9, %s1120_s9  }
   0x5   : > { %s27_s17 = sadd.s32 1, %s973_s13  ;;  %s85_s18 = sadd.s32 1, %s965_s11 }
   0x6   : > { %p29_p0 = scmp.ge.s32.totalorder %s27_s17, 2  ;;  %p95_p1 = scmp.ne.s32.totalorder %s965_s11, %s961_s10 }
   0x7   : > { %p96_p2 = scmp.eq.s32.totalorder %s769_s15, 1  ;;  %p101_p3 = scmp.ne.s32.totalorder %s961_s10, %s957_s9 }
   0x8   : > { %s1126_s17 = smov (%p29_p0, %s27_s17), 0  ;;  %p102_p5 = scmp.eq.s32.totalorder %s770_s16, 1 }
   0x9   : > { %p1037_p4 = por %p96_p2, %p95_p1  ;;  %s80_s20 = ssub.s32 %s973_s13, %s1126_s17 }
   0xa   : > { %p773_p6 = scmp.ge.s32.totalorder %s977_s14, 1  ;;  %p83_p7 = scmp.eq.s32.totalorder %s80_s20, 0 }
   0xb   : > { %p1044_p8 = por %p102_p5, %p101_p3  ;;  %p136_p9 = scmp.lt.s32.totalorder %s977_s14, 3 }
   0xc   : > { %s1050_s22 = scalar_select %p83_p7, %s965_s11, %s85_s18  }
   0xd   : > { %p137_p10 = pnand %p773_p6, %p136_p9 }
   0xe   : > { %v175_v0 = vld [vmem:[%s1116_s1] sm:$0xff] (!%p137_p10)  ;;  %p163_p11 = scmp.lt.s32.totalorder (!%p137_p10), %s969_s12, 1  ;;  %vm176_vm0 = vcmask (!%p137_p10), 64512   ;;  %s159_s30 = sand.u32 (!%p137_p10), 1, %s961_s10  }
   0xf   : > { %140 = sbr.rel (%p137_p10) target bundleno = 285 (0x11d), region = 28  ;;  %v184_v1 = vand.u32 (!%p137_p10), 4294901760, %v175_v0  ;;  %s774_s3 = sshll.u32 (!%p137_p10), %s159_s30, 4 }
  0x10   : > { %s161_s4 = scalar_lea.vmem (!%p137_p10), [#allocation2], %s774_s3  ;;  %s783_s6 = sshll.u32 (!%p137_p10), %s969_s12, 8 }
  0x11   : > { %817 = vmatprep.subr.mxu0 (!%p137_p10), %v184_v1  ;;  %802 = vmatprep.subr.mxu1 (!%p137_p10), %v184_v1  ;;  %v271_v2 = vsub.f32 (!%p137_p10), %v175_v0, %v184_v1  ;;  %s690_s5 = sshll.u32 (!%p137_p10), %s161_s4, 4  ;;  %s1067_s15 = scalar_lea.hbm (!%p137_p10), %s1117_s2, %s783_s6  ;;  %s1062_s5 = int_to_ptr.vmem [resolvable:$true] %s690_s5 }
  0x12   : > { %818 = vmatpush3.msra.mxu0 (!%p137_p10), %v184_v1  ;;  %803 = vmatpush3.msra.mxu1 (!%p137_p10), %v184_v1  ;;  %s1069_s16 = scalar_lea.sflag (!%p137_p10), [#allocation3], %s159_s30  ;;  %s899_s18 = scalar_lea.vmem (!%p137_p10), %s1062_s5, 256 }
  0x13   : > { %v272_v3 = vand.u32 (!%p137_p10), 4294901760, %v271_v2  ;;  %p900_p12 = scmp.ne.s32.totalorder (!%p137_p10), %s1062_s5, %s899_s18 }
  0x15   : > { %v273_v8 = vsub.f32 (!%p137_p10), %v271_v2, %v272_v3  ;;  %822 = vmatprep.subr.mxu0 (!%p137_p10), %v272_v3  ;;  %p901_p13 = pnand (!%p137_p10), %p900_p12, %p1037_p4 }
  0x16   : > { %s164_s25 = scalar_select %p163_p11, %s969_s12, 1 }
  0x17   : > { %v274_v11 = vand.u32 4294901760, %v273_v8  ;;  %p902_p0 = pneg %p901_p13  ;;  %s979_s12 = smov [#allocation2]  }
  0x18   : > { %s782_s26 = sshll.u32 %s164_s25, 4  ;;  %s903_s20 = sshll.u32 %s979_s12, 4  ;;  %s904_s20 = int_to_ptr.vmem [resolvable:$false] %s903_s20 }
  0x19   : > { %s170_s29 = scalar_lea.vmem %s1115_s0, %s782_s26  ;;  %807 = vmatprep.subr.mxu1 %v274_v11  ;;  %s905_s23 = scalar_lea.vmem %s904_s20, 512 }
  0x1a   : > { %v173_v4 = vld [vmem:[%s170_s29] sm:$0xff]  ;;  %v174_v5 = vld [vmem:[%s170_s29 + $0x8] sm:$0xff]  ;;  %p906_p1 = scmp.lt.s32.totalorder %s1062_s5, %s904_s20  ;;  %p907_p2 = scmp.lt.s32.totalorder %s905_s23, %s899_s18 }
  0x1b   : > { %v178_v6 = vsel %vm176_vm0, %v173_v4, 0  ;;  %v181_v7 = vsel %vm176_vm0, %v174_v5, 0 }
  0x1c   : > { %v249_v9 = vand.u32 4294901760, %v178_v6  ;;  %v259_v10 = vand.u32 4294901760, %v181_v7  ;;  %p908_p3 = por %p907_p2, %p906_p1 }
  0x1e   : > { %v250_v12 = vsub.f32 %v178_v6, %v249_v9  ;;  %v260_v13 = vsub.f32 %v181_v7, %v259_v10  ;;  %p909_p5 = pnand %p908_p3, %p902_p0 }
  0x20   : > { %v251_v14 = vand.u32 4294901760, %v250_v12  ;;  %v261_v15 = vand.u32 4294901760, %v260_v13 }
  0x22   : > { %819 = vmatprep.mubr.f32.mxu0 %v251_v14  ;;  %v252_v16 = vsub.f32 %v250_v12, %v251_v14  ;;  %v262_v17 = vsub.f32 %v260_v13, %v261_v15 }
  0x23   : > { %820 = vmatmul.mubr.f32.vlgmr.msra.gmra.mrb[0].mxu0 %v261_v15 }
  0x24   : > { %v253_v18 = vand.u32 4294901760, %v252_v16  ;;  %v263_v19 = vand.u32 4294901760, %v262_v17  ;;  %823 = vmatpush3.msra.mxu0 %v272_v3  ;;  %824 = vmatprep.mubr.f32.mxu0 %v249_v9 }
  0x25   : > { %827 = vmatprep.subr.mxu0 %v184_v1 }
  0x26   : > { %804 = vmatprep.mubr.f32.mxu1 %v253_v18 }
  0x27   : > { %805 = vmatmul.mubr.f32.vlgmr.msra.gmra.mrb[0].mxu1 %v263_v19 }
  0x28   : > { %808 = vmatpush3.msra.mxu1 %v274_v11  ;;  %809 = vmatprep.mubr.f32.mxu1 %v249_v9 }
  0x29   : > { %812 = vmatprep.subr.mxu1 %v271_v2 }
  0x2b   : > { %825 = vmatmul.mubr.f32.vlgmr.msra.gmra.mrb[0].mxu0 %v259_v10 }
  0x2c   : > { %828 = vmatpush3.msra.mxu0 %v184_v1  ;;  %829 = vmatprep.mubr.f32.mxu0 %v249_v9 }
  0x2f   : > { %810 = vmatmul.mubr.f32.vlgmr.msra.gmra.mrb[0].mxu1 %v259_v10 }
  0x30   : > { %813 = vmatpush3.msra.mxu1 %v271_v2  ;;  %814 = vmatprep.mubr.f32.mxu1 %v250_v12 }
  0x33   : > { %830 = vmatmul.mubr.f32.vlgmr.msra.gmra.mrb[0].mxu0 %v259_v10 }
  0x37   : > { %815 = vmatmul.mubr.f32.vlgmr.msra.gmra.mrb[0].mxu1 %v260_v13 }
 0x106   : > { %v831_v20 = vpop.f32.mrb[0].mxu0 }
 0x107   : > { %v662_v21 = vpop.f32.mrb[1].mxu0 }
 0x10a   : > { %v816_v22 = vpop.f32.mrb[0].mxu1 }
 0x10b   : > { %v832_v23 = vadd.f32 %v831_v20, %v816_v22  ;;  %v421_v24 = vpop.f32.mrb[1].mxu1 }
 0x10c   : > { %v833_v25 = vadd.f32 %v662_v21, %v421_v24 }
 0x10d   : > { %673 = vst [vmem:[%s161_s4 + $0x8] sm:$0xff] %v832_v23 }
 0x10e   : > { %672 = vst [vmem:[%s161_s4] sm:$0xff] %v833_v25 }
 0x10f   : > { %912 = shalt.err (!%p909_p5)
}
 0x110   : > { %s913_s24 = scalar_lea.hbm %s1067_s15, 256  ;;  %s917_s27 = scalar_lea.hbm %s1117_s2, 512 }
 0x111   : > { %p914_p6 = scmp.ne.s32.totalorder %s1067_s15, %s913_s24  ;;  %p918_p10 = scmp.lt.u32.totalorder %s1067_s15, %s1117_s2 }
 0x112   : > { %p919_p11 = scmp.lt.u32.totalorder %s917_s27, %s913_s24  ;;  %p921_p13 = scmp.lt.u32.totalorder %s913_s24, %s1067_s15 }
 0x113   : > { %p915_p7 = pnand %p914_p6, %p1037_p4 }
 0x114   : > { %p920_p12 = por %p919_p11, %p918_p10 }
 0x115   : > { %p916_p9 = pneg %p915_p7 }
 0x116   : > { %p922_p0 = por %p921_p13, %p920_p12 }
 0x118   : > { %p923_p1 = pnand %p922_p0, %p916_p9 }
 0x11a   : > { %926 = shalt.err (!%p923_p1)
}
 0x11b   : > { %s980_s30 = smov 128   ;;  %s981_s3 = smov 8  }
 0x11c   : > { %842 = dma.vmem_to_hbm [thread:$0]  (%p1037_p4), %s1062_s5, 256, %s1067_s15, %s1069_s16, %s980_s30, %s980_s30, %s981_s3  }
 0x11d PF: > { %p848_p2 = scmp.ge.s32.totalorder %s977_s14, 2  ;;  %s705_s4 = sand.u32 1, %s957_s9  }
 0x11e   : > { %s706_s6 = scalar_lea.sflag [#allocation3], %s705_s4 }
 0x11f   : > { %p845_p3 = pnand %p848_p2, %p1044_p8 }
 0x121   : > { %952 = dma.done.wait (!%p845_p3), %s706_s6, 256  }
 0x122   : > { %954 = vsyncadd (!%p845_p3), %s706_s6, 4294967040  ;;  %s15_s14 = sadd.s32 1, %s977_s14   ;;  %s1120_s9 = smov %s961_s10 }
 0x123   : > { %p12_p5 = scmp.ge.s32.totalorder %s15_s14, 4   ;;  %s1121_s10 = smov %s965_s11 }
 0x124   : > { %s1122_s11 = smov %s1050_s22  ;;  %s1123_s12 = smov %s973_s13 }
 0x125   : > { %s1124_s13 = smov %s1126_s17  ;;  %14 = sbr.rel (!%p12_p5) target bundleno = 4 (0x4), region = 63 }
 0x12c   :  { %711 = vsyncpa [#allocation3], 1 }
 0x12d   :  { %713 = vsyncpa [#allocation3 + $0x1], 1 }

</bundles_post_ra>
